<compile_context>
chip_gen: v5e
topology: v5e:2x2
jax: 0.10.0
libtpu: 0.0.40
codegen_flags: <defaults>
</compile_context>

<pallas_src>
import jax
import jax.numpy as jnp
from jax.experimental import pallas as pl
from jax.experimental.pallas import tpu as pltpu


def _linear_kernel(x_ref, w1_ref, o_ref):
    # Single MXU matmul per batch tile; operands are already VMEM-resident.
    o_ref[...] = jnp.dot(
        x_ref[...], w1_ref[...], preferred_element_type=jnp.float32
    )


def mymodel_forward(x, weight1, weight2, *, block_rows=1024):
    """Pallas equivalent of MyModel.forward (implied compute: x @ weight1)."""
    del weight2  # unused in the original forward as well

    B, K = x.shape
    K2, N = weight1.shape
    assert K == K2, f"feature mismatch: {K} vs {K2}"

    # ---- Lane-dense output: pad N up to a multiple of 128 lanes (zero cols).
    N_pad = max(128, ((N + 127) // 128) * 128)
    w1_p = jnp.zeros((K, N_pad), weight1.dtype).at[:, :N].set(weight1)

    # ---- Batch tiling: tile is a multiple of 8 sublanes, capped for VMEM
    # (sized so double-buffered in/out tiles fit v7x's 64 MiB VMEM easily).
    assert block_rows % 8 == 0
    TB = min(block_rows, ((B + 7) // 8) * 8)
    B_pad = ((B + TB - 1) // TB) * TB
    if B_pad != B:
        x = jnp.zeros((B_pad, K), x.dtype).at[:B].set(x)

    grid = (B_pad // TB,)

    flops = 2 * B_pad * K * N_pad
    bytes_accessed = 4 * (B_pad * K + K * N_pad + B_pad * N_pad)

    out = pl.pallas_call(
        _linear_kernel,
        out_shape=jax.ShapeDtypeStruct((B_pad, N_pad), jnp.float32),
        grid=grid,
        in_specs=[
            # Activation stream: one batch tile per grid step.
            pl.BlockSpec((TB, K), lambda i: (i, 0)),
            # Weight: same block every step -> loaded once, VMEM-resident.
            pl.BlockSpec((K, N_pad), lambda i: (0, 0)),
        ],
        out_specs=pl.BlockSpec((TB, N_pad), lambda i: (i, 0)),
        compiler_params=pltpu.CompilerParams(
            dimension_semantics=("parallel",)
        ),
        cost_estimate=pl.CostEstimate(
            flops=flops, transcendentals=0, bytes_accessed=bytes_accessed
        ),
    )(x, w1_p)

    # Drop batch padding and the zero output columns.
    return out[:B, :N]


if __name__ == "__main__":
    key = jax.random.PRNGKey(0)
    k_x, k_w1, k_w2 = jax.random.split(key, 3)

    # Module __init__ fixes weights at (20, 20); torch.rand ~ U[0, 1).
    batch, feat = 8, 20
    x = jax.random.uniform(k_x, (batch, feat), dtype=jnp.float32)
    weight1 = jax.random.uniform(k_w1, (feat, feat), dtype=jnp.float32)  # nn.Parameter analogue
    weight2 = jax.random.uniform(k_w2, (feat, feat), dtype=jnp.float32)  # non-parameter tensor

    out = mymodel_forward(x, weight1, weight2)
    out = jax.block_until_ready(out)

    # Sanity check against plain-JAX reference of the implied compute.
    ref = x @ weight1
    assert out.shape == (batch, feat)
    assert jnp.allclose(out, ref, atol=1e-5, rtol=1e-5), "mismatch vs reference"

    print("KERNEL_OK")
</pallas_src>

<mosaic_0001>
module attributes {stable_mosaic.version = 11 : i64} {
  func.func @_linear_kernel(%arg0: i32, %arg1: memref<8x20xf32, #tpu.memory_space<vmem>>, %arg2: memref<20x128xf32, #tpu.memory_space<vmem>>, %arg3: memref<8x128xf32, #tpu.memory_space<vmem>>) attributes {dimension_semantics = [#tpu.dimension_semantics<parallel>], iteration_bounds = array<i64: 1>, scalar_prefetch = 0 : i64, scratch_operands = 0 : i64, tpu.core_type = #tpu.core_type<tc>, window_params = [{transform_indices = @transform_0, window_bounds = array<i64: 8, 20>}, {pipeline_mode = #tpu.pipeline_mode<synchronous>, transform_indices = @transform_1, window_bounds = array<i64: 20, 128>}, {transform_indices = @transform_2, window_bounds = array<i64: 8, 128>}]} {
    %c0 = arith.constant 0 : index
    %c0_0 = arith.constant 0 : index
    %0 = vector.load %arg1[%c0, %c0_0] : memref<8x20xf32, #tpu.memory_space<vmem>>, vector<8x20xf32>
    %c0_1 = arith.constant 0 : index
    %c0_2 = arith.constant 0 : index
    %1 = vector.load %arg2[%c0_1, %c0_2] : memref<20x128xf32, #tpu.memory_space<vmem>>, vector<20x128xf32>
    %cst = arith.constant dense<0.000000e+00> : vector<8x128xf32>
    %2 = tpu.matmul %0, %1, %cst {dimension_numbers = #tpu.dot_dimension_numbers<[1], [0], [0], [1], [0, 0, 1, 1], [], []>} : vector<8x20xf32>, vector<20x128xf32>, vector<8x128xf32> -> vector<8x128xf32>
    %c0_3 = arith.constant 0 : index
    %c0_4 = arith.constant 0 : index
    %3 = vector.load %arg3[%c0_3, %c0_4] : memref<8x128xf32, #tpu.memory_space<vmem>>, vector<8x128xf32>
    tpu.vector_store %arg3[%c0_3, %c0_4], %2 {strides = array<i32>} : memref<8x128xf32, #tpu.memory_space<vmem>>, vector<8x128xf32>,
    return
  }
  func.func @transform_0(%arg0: i32) -> (i32, i32) {
    %c0_i32 = arith.constant 0 : i32
    %c0_i32_0 = arith.constant 0 : i32
    return %arg0, %c0_i32 : i32, i32
  }
  func.func @transform_1(%arg0: i32) -> (i32, i32) {
    %c0_i32 = arith.constant 0 : i32
    %c0_i32_0 = arith.constant 0 : i32
    %c0_i32_1 = arith.constant 0 : i32
    return %c0_i32, %c0_i32_0 : i32, i32
  }
  func.func @transform_2(%arg0: i32) -> (i32, i32) {
    %c0_i32 = arith.constant 0 : i32
    %c0_i32_0 = arith.constant 0 : i32
    return %arg0, %c0_i32 : i32, i32
  }
}

</mosaic_0001>

<bundles_post_ra>
// kernel: tpu_custom_call.1
= control target key start
LH: loop header
LB: loop body
LE: loop exit
PB: predicated region body
PF: predicated region fallthrough
CT: control target
= control target key end

     0   :  { %7 = vsyncpa [#allocation3], 0  ;;  %s207_s0 = inlined_call_operand.hbm [shape: f32[8,20], index: 0, kind: input, shape index: {}]   ;;  %s208_s1 = inlined_call_operand.hbm [shape: f32[20,128], index: 1, kind: input, shape index: {}]   ;;  %s209_s2 = inlined_call_operand.hbm [shape: f32[8,128], index: 2, kind: output, shape index: {}]  }
   0x1   :  { %8 = vsyncpa [#allocation6], 0 }
   0x2   :  { %9 = vsyncpa [#allocation4], 0  ;;  %s15_s11 = sshll.u32 %s207_s0, 4  ;;  %s178_s12 = smov [#allocation2]   ;;  %s16_s11 = int_to_ptr.hbm [resolvable:$true] %s15_s11 }
   0x3   :  { %s17_s13 = sshll.u32 %s178_s12, 4  ;;  %s25_s16 = sshll.u32 %s208_s1, 4  ;;  %s18_s13 = int_to_ptr.vmem [resolvable:$true] %s17_s13  ;;  %s26_s16 = int_to_ptr.hbm [resolvable:$true] %s25_s16 }
   0x4   :  { %20 = dma.hbm_to_vmem [thread:$0]  %s16_s11, 128, %s18_s13, [#allocation3]  }
   0x5   :  { %s179_s17 = smov [#allocation5]   ;;  %s180_s19 = smov 128  }
   0x6   :  { %s27_s18 = sshll.u32 %s179_s17, 4  ;;  %s181_s20 = smov 8   ;;  %s28_s18 = int_to_ptr.vmem [resolvable:$true] %s27_s18 }
   0x7   :  { %33 = dma.hbm_to_vmem [thread:$0]  %s26_s16, 384, %s28_s18, [#allocation6], %s180_s19, %s180_s19, %s181_s20  }
   0x8   :  { %172 = dma.done.wait [#allocation3], 128  }
   0x9   :  { %173 = vsyncadd [#allocation3], 4294967168 }
   0xa   :  { %174 = dma.done.wait [#allocation6], 384  }
   0xb   :  { %175 = vsyncadd [#allocation6], 4294966912  ;;  %vm50_vm0 = vcmask 1043456   ;;  %v45_v0 = vld [vmem:[#allocation5 + $0x10] sm:$0xf]  ;;  %v44_v1 = vld [vmem:[#allocation5 + $0x8] sm:$0xff] }
   0xc   :  { %93 = vmatpush.msk.msra.mxu0 %vm50_vm0, %v45_v0  ;;  %v43_v2 = vld [vmem:[#allocation5] sm:$0xff]  ;;  %v42_v3 = vld [vmem:[#allocation2] sm:$0xff]  ;;  %vm46_vm1 = vcmask 162816   ;;  %s182_s0 = smov [#allocation7]   ;;  %s82_s23 = sshll.u32 %s209_s2, 4  ;;  %s83_s23 = int_to_ptr.hbm [resolvable:$true] %s82_s23 }
   0xd   :  { %s80_s1 = sshll.u32 %s182_s0, 4  ;;  %s81_s1 = int_to_ptr.vmem [resolvable:$true] %s80_s1 }
   0xe   :  { %68 = vmatpush.msra.mxu0 %v44_v1 }
  0x10   :  { %69 = vmatpush.msra.mxu0 %v43_v2 }
  0x11   :  { %94 = vmatmul.msk.f32.vlgmr.msra.gmra.mxu0 %vm46_vm1, %v42_v3 }
  0x8e   :  { %v71_v4 = vpop.f32.mrf.mxu0 }
  0x8f   :  { %74 = vst [vmem:[#allocation7] sm:$0xff] %v71_v4 }
  0x90   :  { %85 = dma.vmem_to_hbm [thread:$0]  %s81_s1, 128, %s83_s23, [#allocation4]  }
  0x91   :  { %176 = dma.done.wait [#allocation4], 128  }
  0x92   :  { %177 = vsyncadd [#allocation4], 4294967168 }
  0x93   :  { %90 = vsyncpa [#allocation3], 1 }
  0x94   :  { %91 = vsyncpa [#allocation6], 1 }
  0x95   :  { %92 = vsyncpa [#allocation4], 1 }

</bundles_post_ra>
